<compile_context>
chip_gen: v7x
topology: tpu7x:2x2x1
jax: 0.10.0
libtpu: 0.0.40
codegen_flags: <defaults>
</compile_context>

<pallas_src>
import functools

import jax
import jax.numpy as jnp
from jax.experimental import pallas as pl
from jax.experimental.pallas import tpu as pltpu

HIDDEN = 128
OUT_PAD = 128  # lane-padded width of the final matmul RHS (compute only)


def _round_up(x: int, m: int) -> int:
    return ((x + m - 1) // m) * m


def _cdiv(a: int, b: int) -> int:
    return (a + b - 1) // b


def actor_kernel(x_ref, w1_ref, b1_ref, w2_ref, b2_ref, w3_ref, b3_ref, o_ref):
    out_dim = o_ref.shape[-1]
    # Layer 1: full f32 (unnormalized RL states keep their mantissa; K is tiny).
    h1 = jnp.dot(x_ref[...], w1_ref[...],
                 preferred_element_type=jnp.float32) + b1_ref[...]
    h1 = jnp.maximum(h1, 0.0)
    # Layer 2: bf16 operands, f32 accumulate, f32 bias + ReLU.
    h2 = jnp.dot(h1.astype(jnp.bfloat16), w2_ref[...],
                 preferred_element_type=jnp.float32) + b2_ref[...]
    h2 = jnp.maximum(h2, 0.0)
    # Output layer: RHS lane-padded to 128 for a clean MXU shape; slice the
    # useful lanes in-register, add the (unpadded) bias, tanh, narrow store.
    a = jnp.dot(h2.astype(jnp.bfloat16), w3_ref[...],
                preferred_element_type=jnp.float32)
    a = a[:, :out_dim] + b3_ref[...]
    o_ref[...] = jnp.tanh(a).astype(o_ref.dtype)


def prepare_actor_params(params):
    """One-time conversion of f32 module params into kernel-ready form.

    Do this once (outside the per-step path): it hoists the bf16 casts and the
    final-layer lane padding out of every forward call.
    """
    w1, b1 = params["hidden1"]
    w2, b2 = params["hidden2"]
    w3, b3 = params["out"]
    out_dim = w3.shape[1]
    return {
        "w1": w1.astype(jnp.float32),
        "b1": b1.astype(jnp.float32),
        "w2": w2.astype(jnp.bfloat16),
        "b2": b2.astype(jnp.float32),
        "w3": jnp.pad(w3, ((0, 0), (0, OUT_PAD - out_dim))).astype(jnp.bfloat16),
        "b3": b3.astype(jnp.float32),        # unpadded: out_dim read from here
    }


@functools.partial(jax.jit, static_argnames=("tb",))
def actor_forward(state, prep, *, tb: int = 2048):
    """state: [B, in_dim] float32.  prep: output of prepare_actor_params."""
    B, in_dim = state.shape
    out_dim = prep["b3"].shape[1]

    # Batch tile: multiple of 8 (f32 sublane), capped at `tb`.  When there is
    # more than one tile of rows, target >= 2 grid steps so the parallel batch
    # axis can shard across both TensorCores on v7x.
    B8 = _round_up(B, 8)
    if B8 > 8:
        TB = min(_round_up(tb, 8), _round_up(_cdiv(B8, 2), 8))
    else:
        TB = B8
    Bp = _round_up(B, TB)
    state_p = state if Bp == B else jnp.pad(state, ((0, Bp - B), (0, 0)))

    grid = (Bp // TB,)

    # Streaming blocks for state/output; weights/biases resident (constant map).
    x_spec = pl.BlockSpec((TB, in_dim), lambda i: (i, 0))
    o_spec = pl.BlockSpec((TB, out_dim), lambda i: (i, 0))
    resident = lambda shape: pl.BlockSpec(shape, lambda i: (0, 0))

    flops = 2 * Bp * (in_dim * HIDDEN + HIDDEN * HIDDEN + HIDDEN * OUT_PAD)
    bytes_accessed = (
        Bp * in_dim * 4                                  # f32 state in
        + in_dim * HIDDEN * 4 + HIDDEN * 4               # f32 layer-1 weights
        + HIDDEN * HIDDEN * 2 + HIDDEN * 4               # bf16 w2 + f32 b2
        + HIDDEN * OUT_PAD * 2 + out_dim * 4             # bf16 w3 + f32 b3
        + Bp * out_dim * 4                               # narrow f32 out
    )
    cost = pl.CostEstimate(flops=flops,
                           transcendentals=Bp * out_dim,
                           bytes_accessed=bytes_accessed)

    out_p = pl.pallas_call(
        actor_kernel,
        out_shape=jax.ShapeDtypeStruct((Bp, out_dim), jnp.float32),
        grid=grid,
        in_specs=[
            x_spec,
            resident((in_dim, HIDDEN)), resident((1, HIDDEN)),
            resident((HIDDEN, HIDDEN)), resident((1, HIDDEN)),
            resident((HIDDEN, OUT_PAD)), resident((1, out_dim)),
        ],
        out_specs=o_spec,
        compiler_params=pltpu.CompilerParams(
            dimension_semantics=("parallel",)),
        cost_estimate=cost,
    )(state_p, prep["w1"], prep["b1"], prep["w2"], prep["b2"],
      prep["w3"], prep["b3"])

    return out_p[:B]


def init_actor_params(key, in_dim, out_dim, init_w=3e-3):
    """Init matching PyTorch Linear defaults (uniform +-1/sqrt(fan_in)), with
    the final layer re-initialized uniform(-init_w, init_w) as in the module."""
    k1, k2, k3, k4, k5, k6 = jax.random.split(key, 6)

    def linear(kw, kb, fan_in, fan_out, bound):
        w = jax.random.uniform(kw, (fan_in, fan_out), jnp.float32, -bound, bound)
        b = jax.random.uniform(kb, (1, fan_out), jnp.float32, -bound, bound)
        return w, b

    p = {}
    p["hidden1"] = linear(k1, k2, in_dim, HIDDEN, 1.0 / float(jnp.sqrt(in_dim)))
    p["hidden2"] = linear(k3, k4, HIDDEN, HIDDEN, 1.0 / float(jnp.sqrt(HIDDEN)))
    p["out"] = linear(k5, k6, HIDDEN, out_dim, init_w)
    return p


def actor_reference_f32(state, params):
    """Pure-JAX f32 reference (matches the PyTorch module exactly)."""
    w1, b1 = params["hidden1"]
    w2, b2 = params["hidden2"]
    w3, b3 = params["out"]
    x = jnp.maximum(state @ w1 + b1, 0.0)
    x = jnp.maximum(x @ w2 + b2, 0.0)
    return jnp.tanh(x @ w3 + b3)


def actor_reference_matched(state, params):
    """Reference matching the kernel's numerics (f32 layer 1; bf16 operands /
    f32 accumulation for layers 2 and 3)."""
    w1, b1 = params["hidden1"]
    w2, b2 = params["hidden2"]
    w3, b3 = params["out"]

    def dot_bf16(a, w):
        return jnp.dot(a.astype(jnp.bfloat16), w.astype(jnp.bfloat16),
                       preferred_element_type=jnp.float32)

    x = jnp.maximum(jnp.dot(state, w1, preferred_element_type=jnp.float32) + b1, 0.0)
    x = jnp.maximum(dot_bf16(x, w2) + b2, 0.0)
    return jnp.tanh(dot_bf16(x, w3) + b3)


if __name__ == "__main__":
    key = jax.random.PRNGKey(0)
    k_x, k_x2, k_p = jax.random.split(key, 3)

    batch, in_dim, out_dim = 2, 16, 4
    state = jax.random.normal(k_x, (batch, in_dim), dtype=jnp.float32)
    params = init_actor_params(k_p, in_dim, out_dim)
    prep = prepare_actor_params(params)   # one-time cast/pad, reused per call

    # Small batch (single grid step).
    action = actor_forward(state, prep)
    action = jax.block_until_ready(action)
    assert action.shape == (batch, out_dim)

    ref_matched = actor_reference_matched(state, params)
    assert jnp.allclose(action, ref_matched, atol=2e-3, rtol=1e-3), \
        "mismatch vs matched (mixed-precision) reference"
    ref_f32 = actor_reference_f32(state, params)
    assert jnp.allclose(action, ref_f32, atol=2e-2), "mismatch vs f32 reference"

    # Slightly larger batch: exercises batch padding + a 2-step parallel grid.
    state2 = jax.random.normal(k_x2, (37, in_dim), dtype=jnp.float32)
    action2 = jax.block_until_ready(actor_forward(state2, prep))
    assert action2.shape == (37, out_dim)
    assert jnp.allclose(action2, actor_reference_matched(state2, params),
                        atol=2e-3, rtol=1e-3), "multi-tile mismatch"

    print("KERNEL_OK")
</pallas_src>

<mosaic_0001>
module attributes {stable_mosaic.version = 11 : i64} {
  func.func @actor_kernel(%arg0: i32, %arg1: memref<8x16xf32, #tpu.memory_space<vmem>>, %arg2: memref<16x128xf32, #tpu.memory_space<vmem>>, %arg3: memref<1x128xf32, #tpu.memory_space<vmem>>, %arg4: memref<128x128xbf16, #tpu.memory_space<vmem>>, %arg5: memref<1x128xf32, #tpu.memory_space<vmem>>, %arg6: memref<128x128xbf16, #tpu.memory_space<vmem>>, %arg7: memref<1x4xf32, #tpu.memory_space<vmem>>, %arg8: memref<8x4xf32, #tpu.memory_space<vmem>>) attributes {dimension_semantics = [#tpu.dimension_semantics<parallel>], iteration_bounds = array<i64: 1>, scalar_prefetch = 0 : i64, scratch_operands = 0 : i64, tpu.core_type = #tpu.core_type<tc>, window_params = [{transform_indices = @transform_0, window_bounds = array<i64: 8, 16>}, {pipeline_mode = #tpu.pipeline_mode<synchronous>, transform_indices = @transform_1, window_bounds = array<i64: 16, 128>}, {pipeline_mode = #tpu.pipeline_mode<synchronous>, transform_indices = @transform_2, window_bounds = array<i64: 1, 128>}, {pipeline_mode = #tpu.pipeline_mode<synchronous>, transform_indices = @transform_3, window_bounds = array<i64: 128, 128>}, {pipeline_mode = #tpu.pipeline_mode<synchronous>, transform_indices = @transform_4, window_bounds = array<i64: 1, 128>}, {pipeline_mode = #tpu.pipeline_mode<synchronous>, transform_indices = @transform_5, window_bounds = array<i64: 128, 128>}, {pipeline_mode = #tpu.pipeline_mode<synchronous>, transform_indices = @transform_6, window_bounds = array<i64: 1, 4>}, {transform_indices = @transform_7, window_bounds = array<i64: 8, 4>}]} {
    %c0 = arith.constant 0 : index
    %c0_0 = arith.constant 0 : index
    %0 = vector.load %arg1[%c0, %c0_0] : memref<8x16xf32, #tpu.memory_space<vmem>>, vector<8x16xf32>
    %c0_1 = arith.constant 0 : index
    %c0_2 = arith.constant 0 : index
    %1 = vector.load %arg2[%c0_1, %c0_2] : memref<16x128xf32, #tpu.memory_space<vmem>>, vector<16x128xf32>
    %cst = arith.constant dense<0.000000e+00> : vector<8x128xf32>
    %2 = tpu.matmul %0, %1, %cst {dimension_numbers = #tpu.dot_dimension_numbers<[1], [0], [0], [1], [0, 0, 1, 1], [], []>} : vector<8x16xf32>, vector<16x128xf32>, vector<8x128xf32> -> vector<8x128xf32>
    %c0_3 = arith.constant 0 : index
    %c0_4 = arith.constant 0 : index
    %3 = vector.load %arg3[%c0_3, %c0_4] : memref<1x128xf32, #tpu.memory_space<vmem>>, vector<1x128xf32>
    %4 = vector.broadcast %3 : vector<1x128xf32> to vector<8x128xf32>
    %5 = arith.addf %2, %4 : vector<8x128xf32>
    %cst_5 = arith.constant 0.000000e+00 : f32
    %6 = vector.broadcast %cst_5 : f32 to vector<8x128xf32>
    %7 = arith.maximumf %5, %6 : vector<8x128xf32>
    %8 = arith.truncf %7 : vector<8x128xf32> to vector<8x128xbf16>
    %c0_6 = arith.constant 0 : index
    %c0_7 = arith.constant 0 : index
    %9 = vector.load %arg4[%c0_6, %c0_7] : memref<128x128xbf16, #tpu.memory_space<vmem>>, vector<128x128xbf16>
    %cst_8 = arith.constant dense<0.000000e+00> : vector<8x128xf32>
    %10 = tpu.matmul %8, %9, %cst_8 {dimension_numbers = #tpu.dot_dimension_numbers<[1], [0], [0], [1], [0, 0, 1, 1], [], []>} : vector<8x128xbf16>, vector<128x128xbf16>, vector<8x128xf32> -> vector<8x128xf32>
    %c0_9 = arith.constant 0 : index
    %c0_10 = arith.constant 0 : index
    %11 = vector.load %arg5[%c0_9, %c0_10] : memref<1x128xf32, #tpu.memory_space<vmem>>, vector<1x128xf32>
    %12 = vector.broadcast %11 : vector<1x128xf32> to vector<8x128xf32>
    %13 = arith.addf %10, %12 : vector<8x128xf32>
    %cst_11 = arith.constant 0.000000e+00 : f32
    %14 = vector.broadcast %cst_11 : f32 to vector<8x128xf32>
    %15 = arith.maximumf %13, %14 : vector<8x128xf32>
    %16 = arith.truncf %15 : vector<8x128xf32> to vector<8x128xbf16>
    %c0_12 = arith.constant 0 : index
    %c0_13 = arith.constant 0 : index
    %17 = vector.load %arg6[%c0_12, %c0_13] : memref<128x128xbf16, #tpu.memory_space<vmem>>, vector<128x128xbf16>
    %cst_14 = arith.constant dense<0.000000e+00> : vector<8x128xf32>
    %18 = tpu.matmul %16, %17, %cst_14 {dimension_numbers = #tpu.dot_dimension_numbers<[1], [0], [0], [1], [0, 0, 1, 1], [], []>} : vector<8x128xbf16>, vector<128x128xbf16>, vector<8x128xf32> -> vector<8x128xf32>
    %19 = vector.extract_strided_slice %18 {offsets = [0, 0], sizes = [8, 4], strides = [1, 1]} : vector<8x128xf32> to vector<8x4xf32>
    %c0_15 = arith.constant 0 : index
    %c0_16 = arith.constant 0 : index
    %20 = vector.load %arg7[%c0_15, %c0_16] : memref<1x4xf32, #tpu.memory_space<vmem>>, vector<1x4xf32>
    %21 = vector.broadcast %20 : vector<1x4xf32> to vector<8x4xf32>
    %22 = arith.addf %19, %21 : vector<8x4xf32>
    %23 = math.tanh %22 : vector<8x4xf32>
    %c0_17 = arith.constant 0 : index
    %c0_18 = arith.constant 0 : index
    %24 = vector.load %arg8[%c0_17, %c0_18] : memref<8x4xf32, #tpu.memory_space<vmem>>, vector<8x4xf32>
    tpu.vector_store %arg8[%c0_17, %c0_18], %23 {strides = array<i32>} : memref<8x4xf32, #tpu.memory_space<vmem>>, vector<8x4xf32>,
    return
  }
  func.func @transform_0(%arg0: i32) -> (i32, i32) {
    %c0_i32 = arith.constant 0 : i32
    %c0_i32_0 = arith.constant 0 : i32
    return %arg0, %c0_i32 : i32, i32
  }
  func.func @transform_1(%arg0: i32) -> (i32, i32) {
    %c0_i32 = arith.constant 0 : i32
    %c0_i32_0 = arith.constant 0 : i32
    %c0_i32_1 = arith.constant 0 : i32
    return %c0_i32, %c0_i32_0 : i32, i32
  }
  func.func @transform_2(%arg0: i32) -> (i32, i32) {
    %c0_i32 = arith.constant 0 : i32
    %c0_i32_0 = arith.constant 0 : i32
    %c0_i32_1 = arith.constant 0 : i32
    return %c0_i32, %c0_i32_0 : i32, i32
  }
  func.func @transform_3(%arg0: i32) -> (i32, i32) {
    %c0_i32 = arith.constant 0 : i32
    %c0_i32_0 = arith.constant 0 : i32
    %c0_i32_1 = arith.constant 0 : i32
    return %c0_i32, %c0_i32_0 : i32, i32
  }
  func.func @transform_4(%arg0: i32) -> (i32, i32) {
    %c0_i32 = arith.constant 0 : i32
    %c0_i32_0 = arith.constant 0 : i32
    %c0_i32_1 = arith.constant 0 : i32
    return %c0_i32, %c0_i32_0 : i32, i32
  }
  func.func @transform_5(%arg0: i32) -> (i32, i32) {
    %c0_i32 = arith.constant 0 : i32
    %c0_i32_0 = arith.constant 0 : i32
    %c0_i32_1 = arith.constant 0 : i32
    return %c0_i32, %c0_i32_0 : i32, i32
  }
  func.func @transform_6(%arg0: i32) -> (i32, i32) {
    %c0_i32 = arith.constant 0 : i32
    %c0_i32_0 = arith.constant 0 : i32
    %c0_i32_1 = arith.constant 0 : i32
    return %c0_i32, %c0_i32_0 : i32, i32
  }
  func.func @transform_7(%arg0: i32) -> (i32, i32) {
    %c0_i32 = arith.constant 0 : i32
    %c0_i32_0 = arith.constant 0 : i32
    return %arg0, %c0_i32 : i32, i32
  }
}

</mosaic_0001>

<bundles_post_ra>
// kernel: actor_forward.1
= control target key start
LH: loop header
LB: loop body
LE: loop exit
PB: predicated region body
PF: predicated region fallthrough
CT: control target
= control target key end

     0   :  { %12 = vsyncpa [#allocation3], 0  ;;  %s634_s0 = inlined_call_operand.vmem [shape: f32[8,16], index: 0, kind: input, shape index: {}]   ;;  %s635_s1 = inlined_call_operand.vmem [shape: f32[16,128], index: 1, kind: input, shape index: {}]   ;;  %s636_s2 = inlined_call_operand.vmem [shape: f32[1,128], index: 2, kind: input, shape index: {}]   ;;  %s637_s3 = inlined_call_operand.hbm [shape: bf16[128,128], index: 3, kind: input, shape index: {}]   ;;  %s638_s4 = inlined_call_operand.vmem [shape: f32[1,128], index: 4, kind: input, shape index: {}]   ;;  %s639_s5 = inlined_call_operand.hbm [shape: bf16[128,128], index: 5, kind: input, shape index: {}]   ;;  %s640_s6 = inlined_call_operand.vmem [shape: f32[1,4], index: 6, kind: input, shape index: {}]   ;;  %s641_s7 = inlined_call_operand.vmem [shape: f32[8,4], index: 7, kind: output, shape index: {}]  }
   0x1   :  { %13 = vsyncpa [#allocation5], 0  ;;  %s539_s24 = smov [#allocation2]   ;;  %s491_s28 = scalar_lea.hbm %s637_s3, 1024 }
   0x2   :  { %s25_s25 = sshll.u32 %s539_s24, 4  ;;  %p492_p0 = scmp.ne.s32.totalorder %s637_s3, %s491_s28  ;;  %s26_s25 = int_to_ptr.vmem [resolvable:$true] %s25_s25 }
   0x3   :  { %p495_p1 = scmp.lt.u32.totalorder %s491_s28, %s637_s3 }
   0x5   :  { %p497_p2 = pnand %p495_p1, %p492_p0 }
   0x7   :  { %500 = shalt.err (!%p497_p2)
}
   0x8   :  { %s501_s10 = scalar_lea.vmem %s26_s25, 1024  ;;  %p506_p4 = scmp.lt.s32.totalorder %s26_s25, %s26_s25 }
   0x9   :  { %p502_p3 = scmp.ne.s32.totalorder %s26_s25, %s501_s10  ;;  %p507_p5 = scmp.lt.s32.totalorder %s501_s10, %s501_s10 }
   0xb   :  { %p508_p6 = por %p507_p5, %p506_p4 }
   0xd   :  { %p509_p7 = pnand %p508_p6, %p502_p3 }
   0xf   :  { %512 = shalt.err (!%p509_p7)
}
  0x10   :  { %s540_s11 = smov 64   ;;  %s541_s12 = smov 4  }
  0x11   :  { %31 = dma.hbm_to_vmem [thread:$0]  %s637_s3, 1024, %s26_s25, [#allocation3], %s540_s11, %s540_s11, %s541_s12  }
  0x12   :  { %s542_s15 = smov [#allocation4]   ;;  %s513_s19 = scalar_lea.hbm %s639_s5, 1024 }
  0x13   :  { %s39_s16 = sshll.u32 %s542_s15, 4  ;;  %p514_p8 = scmp.ne.s32.totalorder %s639_s5, %s513_s19  ;;  %s40_s16 = int_to_ptr.vmem [resolvable:$true] %s39_s16 }
  0x14   :  { %p517_p9 = scmp.lt.u32.totalorder %s513_s19, %s639_s5 }
  0x16   :  { %p519_p10 = pnand %p517_p9, %p514_p8 }
  0x18   :  { %522 = shalt.err (!%p519_p10)
}
  0x19   :  { %s523_s24 = scalar_lea.vmem %s40_s16, 1024  ;;  %p528_p12 = scmp.lt.s32.totalorder %s40_s16, %s40_s16 }
  0x1a   :  { %p524_p11 = scmp.ne.s32.totalorder %s40_s16, %s523_s24  ;;  %p529_p13 = scmp.lt.s32.totalorder %s523_s24, %s523_s24 }
  0x1c   :  { %p530_p0 = por %p529_p13, %p528_p12 }
  0x1e   :  { %p531_p1 = pnand %p530_p0, %p524_p11 }
  0x20   :  { %534 = shalt.err (!%p531_p1)
}
  0x21   :  { %45 = dma.hbm_to_vmem [thread:$0]  %s639_s5, 1024, %s40_s16, [#allocation5], %s540_s11, %s540_s11, %s541_s12  }
  0x22   :  { %535 = dma.done.wait [#allocation3], 1024  }
  0x23   :  { %536 = vsyncadd [#allocation3], 4294966272 }
  0x24   :  { %537 = dma.done.wait [#allocation5], 1024  }
  0x25   :  { %538 = vsyncadd [#allocation5], 4294966272  ;;  %v543_v0 = vmov 0.0|0.0   ;;  %vm544_vm0 = vmmov 0   ;;  %v545_v1 = vmov 0.0   ;;  %v56_v2 = vld [vmem:[%s635_s1] sm:$0xff] }
  0x26   :  { %463 = vmatprep.subr.bf16.mxu0 %v543_v0  ;;  %420 = vmatprep.mubr.msk.f32.mxu0 %vm544_vm0, %v545_v1  ;;  %v57_v3 = vld [vmem:[%s635_s1 + $0x8] sm:$0xff]  ;;  %v473_v5 = vld [vmem:[#allocation2] sm:$0xff]   ;;  %v55_v6 = vld [vmem:[%s634_s0] sm:$0xff]  ;;  %vm65_vm1 = vcmask 130048   ;;  %vm367_vm2 = vcmask 31744  }
  0x27   :  { %423 = vmatprep.subr.bf16.mxu1 %v545_v1  ;;  %439 = vmatprep.mubr.msk.bf16.mxu1 %vm544_vm0, %v545_v1  ;;  %v464_v4 = vpack.c.bf16 %v57_v3, %v56_v2  ;;  %v474_v7 = vld [vmem:[#allocation2 + $0x8] sm:$0xff]   ;;  %v475_v8 = vld [vmem:[#allocation2 + $0x10] sm:$0xff]   ;;  %v476_v9 = vld [vmem:[#allocation2 + $0x18] sm:$0xff]  }
  0x28   :  { %424 = vmatpush3.bf16.msra.mxu1 %v473_v5  ;;  %v477_v10 = vld [vmem:[#allocation2 + $0x20] sm:$0xff]   ;;  %v478_v11 = vld [vmem:[#allocation2 + $0x28] sm:$0xff]   ;;  %v479_v12 = vld [vmem:[#allocation2 + $0x30] sm:$0xff]  }
  0x29   :  { %465 = vmatpush3.bf16.msra.mxu0 %v464_v4  ;;  %425 = vmatprep.subr.bf16.mxu1 %v545_v1  ;;  %v480_v13 = vld [vmem:[#allocation2 + $0x38] sm:$0xff]   ;;  %v481_v14 = vld [vmem:[#allocation4] sm:$0xff]   ;;  %v482_v15 = vld [vmem:[#allocation4 + $0x8] sm:$0xff]  }
  0x2a   :  { %443 = vmatprep.subr.bf16.mxu0 %v545_v1  ;;  %v483_v16 = vld [vmem:[#allocation4 + $0x10] sm:$0xff]   ;;  %v484_v17 = vld [vmem:[#allocation4 + $0x18] sm:$0xff]   ;;  %v485_v18 = vld [vmem:[#allocation4 + $0x20] sm:$0xff]  }
  0x2b   :  { %v486_v19 = vld [vmem:[#allocation4 + $0x28] sm:$0xff]   ;;  %v375_v20 = vld [vmem:[%s636_s2] ss:$0 sm:$0xff]  ;;  %v488_v27 = vld [vmem:[#allocation4 + $0x38] sm:$0xff]  }
  0x2c   :  { %421 = vmatmul.mubr.msk.f32.vlgmr.msra.gmra.mrb[0].mxu0 %vm65_vm1, %v55_v6  ;;  %426 = vmatpush3.bf16.msra.mxu1 %v474_v7  ;;  %v487_v26 = vld [vmem:[#allocation4 + $0x30] sm:$0xff]  }
  0x2d   :  { %459 = vmatprep.mubr.msk.bf16.mxu0 %vm544_vm0, %v545_v1  ;;  %427 = vmatprep.subr.bf16.mxu1 %v545_v1  ;;  %v377_v28 = vld [vmem:[%s638_s4] ss:$0 sm:$0xff] }
  0x2e   :  { %444 = vmatpush3.bf16.msra.mxu0 %v481_v14  ;;  %v394_v36 = vld [vmem:[%s640_s6] ss:$0 sm:$0xff] }
  0x2f   :  { %445 = vmatprep.subr.bf16.mxu0 %v545_v1 }
  0x30   :  { %428 = vmatpush3.bf16.msra.mxu1 %v475_v8 }
  0x31   :  { %429 = vmatprep.subr.bf16.mxu1 %v545_v1 }
  0x32   :  { %446 = vmatpush3.bf16.msra.mxu0 %v482_v15 }
  0x33   :  { %447 = vmatprep.subr.bf16.mxu0 %v545_v1 }
  0x34   :  { %430 = vmatpush3.bf16.msra.mxu1 %v476_v9 }
  0x35   :  { %431 = vmatprep.subr.bf16.mxu1 %v545_v1 }
  0x36   :  { %448 = vmatpush3.bf16.msra.mxu0 %v483_v16 }
  0x37   :  { %449 = vmatprep.subr.bf16.mxu0 %v545_v1 }
  0x38   :  { %432 = vmatpush3.bf16.msra.mxu1 %v477_v10 }
  0x39   :  { %433 = vmatprep.subr.bf16.mxu1 %v545_v1 }
  0x3a   :  { %450 = vmatpush3.bf16.msra.mxu0 %v484_v17 }
  0x3b   :  { %451 = vmatprep.subr.bf16.mxu0 %v545_v1 }
  0x3c   :  { %434 = vmatpush3.bf16.msra.mxu1 %v478_v11 }
  0x3d   :  { %435 = vmatprep.subr.bf16.mxu1 %v545_v1 }
  0x3e   :  { %452 = vmatpush3.bf16.msra.mxu0 %v485_v18 }
  0x3f   :  { %453 = vmatprep.subr.bf16.mxu0 %v545_v1 }
  0x40   :  { %436 = vmatpush3.bf16.msra.mxu1 %v479_v12 }
  0x41   :  { %437 = vmatprep.subr.bf16.mxu1 %v545_v1 }
  0x42   :  { %454 = vmatpush3.bf16.msra.mxu0 %v486_v19 }
  0x43   :  { %455 = vmatprep.subr.bf16.mxu0 %v545_v1 }
  0x44   :  { %438 = vmatpush3.bf16.msra.mxu1 %v480_v13 }
  0x46   :  { %456 = vmatpush3.bf16.msra.mxu0 %v487_v26 }
  0x47   :  { %457 = vmatprep.subr.bf16.mxu0 %v545_v1 }
  0x4a   :  { %458 = vmatpush3.bf16.msra.mxu0 %v488_v27 }
  0xff   :  { %v135_v21 = vpop.f32.mrb[0].mxu0 }
 0x100   :  { %v136_v22 = vadd.f32 %v375_v20, %v135_v21  ;;  %v422_v23 = vpop.f32.mrb[1].mxu0 }
 0x102   :  { %v139_v24 = vmax.f32 %v136_v22, 0.0 }
 0x104   :  { %v140_v25 = vpack.c.bf16 %v139_v24, %v139_v24 }
 0x106   :  { %440 = vmatmul.mubr.bf16.vlgmr.msra.gmra.mrb[0].mxu1 %v140_v25 }
 0x1d9   :  { %v246_v29 = vpop.f32.mrb[0].mxu1 }
 0x1da   :  { %v247_v30 = vadd.f32 %v377_v28, %v246_v29  ;;  %v441_v31 = vpop.f32.mrb[1].mxu1 }
 0x1db   :  { %v249_v32 = vpop.f32.mrb[2].mxu1 }
 0x1dc   :  { %v252_v33 = vmax.f32 %v247_v30, 0.0  ;;  %v442_v34 = vpop.f32.mrb[3].mxu1 }
 0x1de   :  { %v253_v35 = vpack.c.bf16 %v252_v33, %v252_v33 }
 0x1e0   :  { %460 = vmatmul.mubr.bf16.vlgmr.msra.gmra.mrb[4].mxu0 %v253_v35 }
 0x2b3   :  { %v352_v37 = vpop.f32.mrb[4].mxu0 }
 0x2b4   :  { %v365_v38 = vadd.f32 %v394_v36, %v352_v37  ;;  %v461_v39 = vpop.f32.mrb[5].mxu0 }
 0x2b5   :  { %v355_v40 = vpop.f32.mrb[6].mxu0 }
 0x2b6   :  { %489 = vtanh.f32 %v365_v38  ;;  %v462_v41 = vpop.f32.mrb[7].mxu0 }
 0x2c0   :  { %v490_v42 = vpop.eup %489 }
 0x2c1   :  { %368 = vst.msk [vmem:[%s641_s7] sm:$0xff] %vm367_vm2, %v490_v42 }
 0x2c2   :  { %373 = vsyncpa [#allocation3], 1 }
 0x2c3   :  { %374 = vsyncpa [#allocation5], 1 }

</bundles_post_ra>
